<compile_context>
chip_gen: v7x
topology: tpu7x:2x2x1
jax: 0.10.0
libtpu: 0.0.40
codegen_flags: <defaults>
</compile_context>

<pallas_src>
import functools

import jax
import jax.numpy as jnp
from jax import lax
from jax.experimental import pallas as pl
from jax.experimental.pallas import tpu as pltpu

LANE = 128


def _focal_kernel(*refs, num_classes, gamma, s_total, sub_blk, inner,
                  num_tiles, use_weights):
    """Grid = (N, pixel_tiles); one step consumes a (C, sub_blk, 128) logits slab.

    refs (in order):
      x_ref   : (C, sub_blk, 128)  logits (native dtype), batch dim squeezed
      t_ref   : (sub_blk, 128)     int16 labels (-1 == padding)
      w_ref   : (C,) f32 in SMEM   per-class weights        [only if use_weights]
      out_ref : (1, 1)             f32 per-(image, tile) partial loss sum
      acc_ref : (8, 128)           f32 scratch accumulator
    """
    if use_weights:
        x_ref, t_ref, w_ref, out_ref, acc_ref = refs
    else:
        x_ref, t_ref, out_ref, acc_ref = refs
        w_ref = None

    i = pl.program_id(1)
    ragged = (s_total % sub_blk) != 0                        # static
    rows_valid_last = s_total - (num_tiles - 1) * sub_blk    # static

    acc_ref[...] = jnp.zeros_like(acc_ref)   # per-tile partial: fresh accumulator

    keep_logits_in_regs = num_classes <= 16  # bound per-class vreg live ranges

    def accumulate(vals):
        """Fold (nrows, 128) chunk contributions into the (8, 128) accumulator."""
        nrows = vals.shape[0]
        r = 0
        folded = None
        while r + 8 <= nrows:
            part = vals[r:r + 8]
            folded = part if folded is None else folded + part
            r += 8
        if folded is not None:
            acc_ref[...] += folded
        if r < nrows:                                        # sub-8-row remainder
            acc_ref[pl.ds(0, nrows - r), :] += vals[r:nrows]

    def chunk(r0, nrows):
        if keep_logits_in_regs:
            xs = [x_ref[c, pl.ds(r0, nrows), :].astype(jnp.float32)
                  for c in range(num_classes)]
            load_x = lambda c: xs[c]
        else:
            # Re-read per pass so only a couple of class slabs are live at once.
            load_x = lambda c: x_ref[c, pl.ds(r0, nrows), :].astype(jnp.float32)

        t = t_ref[pl.ds(r0, nrows), :].astype(jnp.int32)

        # Stable softmax over channels: element-wise max / exp / add across C slabs.
        # TODO(synk): on v6e/v7x the max pass could stay in bf16 for bf16 inputs.
        m = load_x(0)
        for c in range(1, num_classes):
            m = jnp.maximum(m, load_x(c))

        z = jnp.zeros_like(m)            # softmax denominator
        e_true = jnp.zeros_like(m)       # exp(logit - m) at the true class
        if use_weights:
            w_true = jnp.zeros_like(m)   # class weight at the true class (0 otherwise)
        for c in range(num_classes):
            e_c = jnp.exp(load_x(c) - m)
            z = z + e_c
            match = t == c
            e_true = jnp.where(match, e_c, e_true)
            if use_weights:
                w_true = jnp.where(match, w_ref[c], w_true)  # SMEM scalar, no bcast op

        p_true = e_true * pl.reciprocal(z, approx=True)      # EUP slot has slack
        pt = p_true + 1e-6
        logpt = jnp.log(pt)
        if float(gamma) == int(gamma) and gamma >= 0:
            focus = lax.integer_pow(1.0 - pt, int(gamma))
        else:
            focus = jnp.power(1.0 - pt, gamma)

        if use_weights:
            contrib = focus * logpt * w_true                 # 0 for padding/unmatched
        else:
            valid = (t >= 0) & (t < num_classes)             # one mask, not C adds
            contrib = jnp.where(valid, focus * logpt, 0.0)

        if not ragged:
            accumulate(contrib)
        else:
            # Only the last pixel tile can contain garbage (OOB) sublane rows.
            @pl.when(i < num_tiles - 1)
            def _():
                accumulate(contrib)

            @pl.when(i == num_tiles - 1)
            def _():
                rows = lax.broadcasted_iota(jnp.int32, (nrows, LANE), 0)
                rem = rows_valid_last - r0
                accumulate(jnp.where(rows < rem, contrib, 0.0))

    n_full = sub_blk // inner
    tail = sub_blk - n_full * inner
    if n_full == 1:
        chunk(0, inner)                                      # fully static path
    elif n_full > 1:
        @pl.loop(0, n_full)
        def _chunks(j):
            chunk(pl.multiple_of(j * inner, inner), inner)
    if tail:
        chunk(n_full * inner, tail)                          # static tail chunk

    # Per-tile epilogue: one (8,128) cross-lane reduce, negate, scalar store.
    col = jnp.sum(acc_ref[...], axis=0, keepdims=True)       # (1, 128)
    out_ref[...] = -jnp.sum(col, axis=1, keepdims=True)      # (1, 1)


def _pick_tiling(num_classes, s_total, x_itemsize, t_itemsize):
    """Pixel-tile depth (sublane rows of 128 px) and chunk depth from VMEM / vregs."""
    # Chunk depth tied to C so the live class slabs (2 vregs each at f32/inner=16)
    # stay well inside the 64-entry vreg file -> no spills for realistic C.
    if num_classes <= 4:
        inner = 32
    elif num_classes <= 16:
        inner = 16
    else:
        inner = 8
    try:
        vmem_cap = int(pltpu.get_tpu_info().vmem_capacity_bytes)
    except Exception:
        vmem_cap = 64 * 1024 * 1024          # conservative (v7x-sized) fallback
    budget = min(vmem_cap // 2, 40 * 1024 * 1024)
    # VMEM bytes per 128-pixel sublane row: double-buffered logits + labels blocks.
    row_bytes = LANE * 2 * (num_classes * x_itemsize + t_itemsize)
    desired = budget // row_bytes
    desired = max(32, min(desired, 2048))
    desired = (desired // 32) * 32           # multiple of every inner / packed tile
    sub_blk = s_total if s_total <= desired else desired
    needed = sub_blk * row_bytes + (2 << 20)
    vmem_limit = int(min(max(needed + (8 << 20), 32 << 20),
                         max(vmem_cap * 3 // 4, 32 << 20)))
    return sub_blk, inner, vmem_limit


def focal_loss(logits, targets, alpha=0.4, gamma=2.0, cls_weights=None):
    """Focal loss matching the PyTorch FocalLoss.forward.

    logits  : (N, C, H, W) float (f32 or bf16)
    targets : (N, H, W)    integer class labels in [0, C)
    returns : scalar float32 loss
    """
    N, C, H, W = logits.shape
    P = H * W

    x = logits.reshape(N, C, P)                  # free contiguous reshape, NCHW kept
    t = targets.reshape(N, P).astype(jnp.int16)  # shrink label HBM traffic (v5e/v6e)

    # Pad the pixel axis to a multiple of 128 lanes only if needed; padded labels
    # are -1 -> zero loss (padded logits are finite zeros, so no NaN risk).
    Pp = pl.cdiv(P, LANE) * LANE
    if Pp != P:
        x = jnp.pad(x, ((0, 0), (0, 0), (0, Pp - P)))
        t = jnp.pad(t, ((0, 0), (0, Pp - P)), constant_values=-1)
    S = Pp // LANE
    x = x.reshape(N, C, S, LANE)
    t = t.reshape(N, S, LANE)

    sub_blk, inner, vmem_limit = _pick_tiling(
        C, S, jnp.dtype(logits.dtype).itemsize, 2)
    num_tiles = pl.cdiv(S, sub_blk)

    use_weights = cls_weights is not None

    kernel = functools.partial(
        _focal_kernel, num_classes=C, gamma=float(gamma), s_total=S,
        sub_blk=sub_blk, inner=inner, num_tiles=num_tiles, use_weights=use_weights)

    in_specs = [
        pl.BlockSpec((None, C, sub_blk, LANE), lambda n, i: (n, 0, i, 0)),   # logits
        pl.BlockSpec((None, sub_blk, LANE), lambda n, i: (n, i, 0)),          # labels
    ]
    inputs = [x, t]
    if use_weights:
        in_specs.append(pl.BlockSpec(memory_space=pltpu.MemorySpace.SMEM))    # (C,) f32
        inputs.append(jnp.asarray(cls_weights, jnp.float32).reshape(C))

    partials = pl.pallas_call(
        kernel,
        out_shape=jax.ShapeDtypeStruct((N, num_tiles, 1, 1), jnp.float32),
        grid_spec=pltpu.PrefetchScalarGridSpec(
            num_scalar_prefetch=0,
            grid=(N, num_tiles),
            in_specs=in_specs,
            out_specs=pl.BlockSpec((None, None, 1, 1), lambda n, i: (n, i, 0, 0)),
            scratch_shapes=[pltpu.VMEM((8, LANE), jnp.float32)],
        ),
        compiler_params=pltpu.CompilerParams(
            dimension_semantics=("parallel", "parallel"),   # pixel tiles shard too
            vmem_limit_bytes=vmem_limit),
    )(*inputs)

    loss = jnp.sum(partials) / (N * P)
    if alpha is not None:
        loss = loss * float(alpha)
    return loss


def focal_loss_ref(logits, targets, alpha=0.4, gamma=2.0, cls_weights=None):
    """Pure-JAX reference mirroring the PyTorch implementation."""
    probs = jax.nn.softmax(logits.astype(jnp.float32), axis=1)
    C = logits.shape[1]
    fl = 0.0
    for c in range(C):
        p = probs[:, c].reshape(-1)
        tgt = (targets == c).astype(jnp.float32).reshape(-1)
        logpt = jnp.log(p + 1e-6)
        pt = jnp.exp(logpt)
        if cls_weights is not None:
            logpt = logpt * cls_weights[c]
        fl = fl + (-((1.0 - pt) ** gamma) * logpt * tgt)
    if alpha is not None:
        fl = fl * alpha
    return jnp.mean(fl)


if __name__ == "__main__":
    key = jax.random.PRNGKey(0)
    k_logits, k_tgt = jax.random.split(key)

    N, C, H, W = 2, 4, 16, 16
    logits = jax.random.normal(k_logits, (N, C, H, W), dtype=jnp.float32)
    targets = jax.random.randint(k_tgt, (N, H, W), 0, C, dtype=jnp.int32)
    cls_weights = jnp.array([1.0, 0.5, 2.0, 1.5], dtype=jnp.float32)

    out_unw = jax.block_until_ready(
        focal_loss(logits, targets, alpha=0.4, gamma=2.0))
    out_w = jax.block_until_ready(
        focal_loss(logits, targets, alpha=0.4, gamma=2.0, cls_weights=cls_weights))

    ref_unw = focal_loss_ref(logits, targets, alpha=0.4, gamma=2.0)
    ref_w = focal_loss_ref(logits, targets, alpha=0.4, gamma=2.0,
                           cls_weights=cls_weights)

    # rtol accounts for the EUP approximate reciprocal (~2^-12 relative error on
    # the softmax denominator); everything else is exact f32.
    assert jnp.allclose(out_unw, ref_unw, rtol=2e-3, atol=1e-5), (out_unw, ref_unw)
    assert jnp.allclose(out_w, ref_w, rtol=2e-3, atol=1e-5), (out_w, ref_w)

    # bf16 logits take the same kernel path (halved logits HBM traffic).
    out_bf16 = jax.block_until_ready(
        focal_loss(logits.astype(jnp.bfloat16), targets, alpha=0.4, gamma=2.0))
    assert jnp.allclose(out_bf16, ref_unw, rtol=1e-1, atol=1e-2), (out_bf16, ref_unw)

    print("KERNEL_OK")
</pallas_src>

<mosaic_0001>
module attributes {stable_mosaic.version = 11 : i64} {
  func.func @_focal_kernel(%arg0: i32, %arg1: i32, %arg2: memref<1x4x2x128xf32, #tpu.memory_space<vmem>>, %arg3: memref<1x2x128xi16, #tpu.memory_space<vmem>>, %arg4: memref<1x1x1x1xf32, #tpu.memory_space<vmem>>, %arg5: memref<8x128xf32, #tpu.memory_space<vmem>>) attributes {dimension_semantics = [#tpu.dimension_semantics<parallel>, #tpu.dimension_semantics<parallel>], iteration_bounds = array<i64: 2, 1>, scalar_prefetch = 0 : i64, scratch_operands = 1 : i64, tpu.core_type = #tpu.core_type<tc>, window_params = [{transform_indices = @transform_0, window_bounds = array<i64: 1, 4, 2, 128>}, {transform_indices = @transform_1, window_bounds = array<i64: 1, 2, 128>}, {transform_indices = @transform_2, window_bounds = array<i64: 1, 1, 1, 1>}]} {
    %cst = arith.constant 0.000000e+00 : f32
    %0 = vector.broadcast %cst : f32 to vector<8x128xf32>
    %c0 = arith.constant 0 : index
    %c0_0 = arith.constant 0 : index
    %1 = vector.load %arg5[%c0, %c0_0] : memref<8x128xf32, #tpu.memory_space<vmem>>, vector<8x128xf32>
    tpu.vector_store %arg5[%c0, %c0_0], %0 {strides = array<i32>} : memref<8x128xf32, #tpu.memory_space<vmem>>, vector<8x128xf32>,
    %c0_1 = arith.constant 0 : index
    %c0_2 = arith.constant 0 : index
    %c0_3 = arith.constant 0 : index
    %c0_4 = arith.constant 0 : index
    %2 = vector.load %arg2[%c0_1, %c0_2, %c0_3, %c0_4] : memref<1x4x2x128xf32, #tpu.memory_space<vmem>>, vector<1x1x2x128xf32>
    %3 = vector.shape_cast %2 : vector<1x1x2x128xf32> to vector<2x128xf32>
    %c0_5 = arith.constant 0 : index
    %c1 = arith.constant 1 : index
    %c0_6 = arith.constant 0 : index
    %c0_7 = arith.constant 0 : index
    %4 = vector.load %arg2[%c0_5, %c1, %c0_6, %c0_7] : memref<1x4x2x128xf32, #tpu.memory_space<vmem>>, vector<1x1x2x128xf32>
    %5 = vector.shape_cast %4 : vector<1x1x2x128xf32> to vector<2x128xf32>
    %c0_8 = arith.constant 0 : index
    %c2 = arith.constant 2 : index
    %c0_9 = arith.constant 0 : index
    %c0_10 = arith.constant 0 : index
    %6 = vector.load %arg2[%c0_8, %c2, %c0_9, %c0_10] : memref<1x4x2x128xf32, #tpu.memory_space<vmem>>, vector<1x1x2x128xf32>
    %7 = vector.shape_cast %6 : vector<1x1x2x128xf32> to vector<2x128xf32>
    %c0_11 = arith.constant 0 : index
    %c3 = arith.constant 3 : index
    %c0_12 = arith.constant 0 : index
    %c0_13 = arith.constant 0 : index
    %8 = vector.load %arg2[%c0_11, %c3, %c0_12, %c0_13] : memref<1x4x2x128xf32, #tpu.memory_space<vmem>>, vector<1x1x2x128xf32>
    %9 = vector.shape_cast %8 : vector<1x1x2x128xf32> to vector<2x128xf32>
    %c0_14 = arith.constant 0 : index
    %c0_15 = arith.constant 0 : index
    %c0_16 = arith.constant 0 : index
    %10 = vector.load %arg3[%c0_14, %c0_15, %c0_16] : memref<1x2x128xi16, #tpu.memory_space<vmem>>, vector<1x2x128xi16>
    %11 = vector.shape_cast %10 : vector<1x2x128xi16> to vector<2x128xi16>
    %12 = arith.extsi %11 : vector<2x128xi16> to vector<2x128xi32>
    %13 = arith.maximumf %3, %5 : vector<2x128xf32>
    %14 = arith.maximumf %13, %7 : vector<2x128xf32>
    %15 = arith.maximumf %14, %9 : vector<2x128xf32>
    %cst_17 = arith.constant 0.000000e+00 : f32
    %16 = vector.broadcast %cst_17 : f32 to vector<2x128xf32>
    %cst_18 = arith.constant 0.000000e+00 : f32
    %17 = vector.broadcast %cst_18 : f32 to vector<2x128xf32>
    %18 = arith.subf %3, %15 : vector<2x128xf32>
    %19 = math.exp %18 : vector<2x128xf32>
    %20 = arith.addf %16, %19 : vector<2x128xf32>
    %c0_i32 = arith.constant 0 : i32
    %21 = vector.broadcast %c0_i32 : i32 to vector<2x128xi32>
    %22 = arith.cmpi eq, %12, %21 : vector<2x128xi32>
    %23 = arith.select %22, %19, %17 : vector<2x128xi1>, vector<2x128xf32>
    %24 = arith.subf %5, %15 : vector<2x128xf32>
    %25 = math.exp %24 : vector<2x128xf32>
    %26 = arith.addf %20, %25 : vector<2x128xf32>
    %c1_i32 = arith.constant 1 : i32
    %27 = vector.broadcast %c1_i32 : i32 to vector<2x128xi32>
    %28 = arith.cmpi eq, %12, %27 : vector<2x128xi32>
    %29 = arith.select %28, %25, %23 : vector<2x128xi1>, vector<2x128xf32>
    %30 = arith.subf %7, %15 : vector<2x128xf32>
    %31 = math.exp %30 : vector<2x128xf32>
    %32 = arith.addf %26, %31 : vector<2x128xf32>
    %c2_i32 = arith.constant 2 : i32
    %33 = vector.broadcast %c2_i32 : i32 to vector<2x128xi32>
    %34 = arith.cmpi eq, %12, %33 : vector<2x128xi32>
    %35 = arith.select %34, %31, %29 : vector<2x128xi1>, vector<2x128xf32>
    %36 = arith.subf %9, %15 : vector<2x128xf32>
    %37 = math.exp %36 : vector<2x128xf32>
    %38 = arith.addf %32, %37 : vector<2x128xf32>
    %c3_i32 = arith.constant 3 : i32
    %39 = vector.broadcast %c3_i32 : i32 to vector<2x128xi32>
    %40 = arith.cmpi eq, %12, %39 : vector<2x128xi32>
    %41 = arith.select %40, %37, %35 : vector<2x128xi1>, vector<2x128xf32>
    %42 = tpu.reciprocal %38 {approx = true} : vector<2x128xf32> -> vector<2x128xf32>
    %43 = arith.mulf %41, %42 : vector<2x128xf32>
    %cst_19 = arith.constant 9.99999997E-7 : f32
    %44 = vector.broadcast %cst_19 : f32 to vector<2x128xf32>
    %45 = arith.addf %43, %44 : vector<2x128xf32>
    %46 = math.log %45 : vector<2x128xf32>
    %cst_20 = arith.constant 1.000000e+00 : f32
    %47 = vector.broadcast %cst_20 : f32 to vector<2x128xf32>
    %48 = arith.subf %47, %45 : vector<2x128xf32>
    %49 = arith.mulf %48, %48 : vector<2x128xf32>
    %c0_i32_21 = arith.constant 0 : i32
    %50 = vector.broadcast %c0_i32_21 : i32 to vector<2x128xi32>
    %51 = arith.cmpi sge, %12, %50 : vector<2x128xi32>
    %c4_i32 = arith.constant 4 : i32
    %52 = vector.broadcast %c4_i32 : i32 to vector<2x128xi32>
    %53 = arith.cmpi slt, %12, %52 : vector<2x128xi32>
    %54 = arith.andi %51, %53 : vector<2x128xi1>
    %55 = arith.mulf %49, %46 : vector<2x128xf32>
    %cst_22 = arith.constant 0.000000e+00 : f32
    %56 = vector.broadcast %cst_22 : f32 to vector<2x128xf32>
    %57 = arith.select %54, %55, %56 : vector<2x128xi1>, vector<2x128xf32>
    %c0_23 = arith.constant 0 : index
    %c0_24 = arith.constant 0 : index
    %58 = vector.load %arg5[%c0_23, %c0_24] : memref<8x128xf32, #tpu.memory_space<vmem>>, vector<2x128xf32>
    %59 = arith.addf %58, %57 : vector<2x128xf32>
    %c0_25 = arith.constant 0 : index
    %c0_26 = arith.constant 0 : index
    %60 = vector.load %arg5[%c0_25, %c0_26] : memref<8x128xf32, #tpu.memory_space<vmem>>, vector<2x128xf32>
    tpu.vector_store %arg5[%c0_25, %c0_26], %59 {strides = array<i32>} : memref<8x128xf32, #tpu.memory_space<vmem>>, vector<2x128xf32>,
    %c0_27 = arith.constant 0 : index
    %c0_28 = arith.constant 0 : index
    %61 = vector.load %arg5[%c0_27, %c0_28] : memref<8x128xf32, #tpu.memory_space<vmem>>, vector<8x128xf32>
    %cst_29 = arith.constant dense<0.000000e+00> : vector<128xf32>
    %62 = vector.multi_reduction <add>, %61, %cst_29 [0] : vector<8x128xf32> to vector<128xf32>
    %63 = vector.shape_cast %62 : vector<128xf32> to vector<1x128xf32>
    %cst_30 = arith.constant dense<0.000000e+00> : vector<1xf32>
    %64 = vector.multi_reduction <add>, %63, %cst_30 [1] : vector<1x128xf32> to vector<1xf32>
    %65 = vector.shape_cast %64 : vector<1xf32> to vector<1x1xf32>
    %cst_31 = arith.constant 0.000000e+00 : f32
    %66 = vector.broadcast %cst_31 : f32 to vector<1x1xf32>
    %67 = arith.subf %66, %65 : vector<1x1xf32>
    %c0_32 = arith.constant 0 : index
    %c0_33 = arith.constant 0 : index
    %c0_34 = arith.constant 0 : index
    %c0_35 = arith.constant 0 : index
    %68 = vector.load %arg4[%c0_32, %c0_33, %c0_34, %c0_35] : memref<1x1x1x1xf32, #tpu.memory_space<vmem>>, vector<1x1x1x1xf32>
    %69 = vector.shape_cast %68 : vector<1x1x1x1xf32> to vector<1x1xf32>
    %70 = vector.shape_cast %67 : vector<1x1xf32> to vector<1x1x1x1xf32>
    tpu.vector_store %arg4[%c0_32, %c0_33, %c0_34, %c0_35], %70 {strides = array<i32>} : memref<1x1x1x1xf32, #tpu.memory_space<vmem>>, vector<1x1x1x1xf32>,
    return
  }
  func.func @transform_0(%arg0: i32, %arg1: i32) -> (i32, i32, i32, i32) {
    %c0_i32 = arith.constant 0 : i32
    %c0_i32_0 = arith.constant 0 : i32
    %c0_i32_1 = arith.constant 0 : i32
    return %arg0, %c0_i32, %arg1, %c0_i32_0 : i32, i32, i32, i32
  }
  func.func @transform_1(%arg0: i32, %arg1: i32) -> (i32, i32, i32) {
    %c0_i32 = arith.constant 0 : i32
    %c0_i32_0 = arith.constant 0 : i32
    return %arg0, %arg1, %c0_i32 : i32, i32, i32
  }
  func.func @transform_2(%arg0: i32, %arg1: i32) -> (i32, i32, i32, i32) {
    %c0_i32 = arith.constant 0 : i32
    %c0_i32_0 = arith.constant 0 : i32
    %c0_i32_1 = arith.constant 0 : i32
    return %arg0, %arg1, %c0_i32, %c0_i32_0 : i32, i32, i32, i32
  }
}

</mosaic_0001>

<bundles_post_ra>
// kernel: tpu_custom_call.1
= control target key start
LH: loop header
LB: loop body
LE: loop exit
PB: predicated region body
PF: predicated region fallthrough
CT: control target
= control target key end

     0   :  { %7 = vsyncpa [#allocation4], 0  ;;  %s680_s0 = inlined_call_operand.hbm [shape: f32[2,4,2,128], index: 0, kind: input, shape index: {}]   ;;  %s681_s1 = inlined_call_operand.vmem [shape: s16[2,2,128], index: 1, kind: input, shape index: {}]   ;;  %s682_s2 = inlined_call_operand.vmem [shape: f32[2,1,1,1], index: 2, kind: output, shape index: {}]  }
   0x1   :  { %9 = vsyncpa [#allocation4 + $0x1], 0  ;;  %s549_s9 = smov 0   ;;  %s551_s10 = smov 0  }
   0x2   :  { %s553_s11 = smov 0   ;;  %s555_s12 = smov 0  }
   0x3   :  { %s557_s13 = smov 0   ;;  %s559_s14 = smov 0  }
   0x4 LB: > { %s363_s15 = sadd.s32 4294967295, %s528_s14   ;;  %s27_s16 = sadd.s32 1, %s524_s13  ;;  %s528_s14 = sphi %s559_s14, %s15_s14   ;;  %s524_s13 = sphi %s557_s13, %s690_s13   ;;  %s520_s12 = sphi %s555_s12, %s689_s12   ;;  %s516_s11 = sphi %s553_s11, %s688_s11   ;;  %s512_s10 = sphi %s551_s10, %s687_s10   ;;  %s508_s9 = sphi %s549_s9, %s686_s9  }
   0x5   : > { %p29_p0 = scmp.ge.s32.totalorder %s27_s16, 2  ;;  %s36_s17 = sadd.s32 1, %s516_s11 }
   0x6   : > { %p43_p1 = scmp.ne.s32.totalorder %s516_s11, %s512_s10  ;;  %p44_p2 = scmp.eq.s32.totalorder %s528_s14, 0 }
   0x7   : > { %s692_s16 = smov (%p29_p0, %s27_s16), 0  ;;  %p49_p4 = scmp.ne.s32.totalorder %s512_s10, %s508_s9 }
   0x8   : > { %p585_p3 = por %p44_p2, %p43_p1  ;;  %s31_s19 = ssub.s32 %s524_s13, %s692_s16 }
   0x9   : > { %p50_p5 = scmp.eq.s32.totalorder %s363_s15, 0  ;;  %p34_p6 = scmp.eq.s32.totalorder %s31_s19, 0 }
   0xa   : > { %p384_p8 = scmp.lt.s32.totalorder %s528_s14, 2  ;;  %s129_s22 = sand.u32 1, %s516_s11  }
   0xb   : > { %p592_p7 = por %p50_p5, %p49_p4  ;;  %s377_s23 = sshll.u32 %s524_s13, 7 }
   0xc   : > { %s598_s21 = scalar_select %p34_p6, %s516_s11, %s36_s17  }
   0xd   : > { %s367_s24 = sshll.u32 %s129_s22, 3  ;;  %s605_s27 = scalar_lea.hbm %s680_s0, %s377_s23 }
   0xe   : > { %s133_s28 = scalar_lea.vmem [#allocation3], %s367_s24  ;;  %p609_p9 = pnand %p384_p8, %p585_p3 }
   0xf   : > { %s141_s29 = sshll.u32 %s133_s28, 4  ;;  %s615_s3 = scalar_lea.sflag [#allocation4], %s129_s22  ;;  %s613_s29 = int_to_ptr.vmem [resolvable:$true] %s141_s29 }
  0x10   : > { %s448_s4 = scalar_lea.hbm %s605_s27, 128  ;;  %p450_p11 = pneg %p609_p9 }
  0x11   : > { %p449_p10 = scmp.ne.s32.totalorder %s605_s27, %s448_s4  ;;  %s453_s7 = scalar_lea.hbm %s680_s0, 256 }
  0x12   : > { %p454_p0 = scmp.lt.u32.totalorder %s605_s27, %s680_s0  ;;  %p455_p1 = scmp.lt.u32.totalorder %s453_s7, %s448_s4 }
  0x13   : > { %p451_p12 = pnand %p450_p11, %p449_p10  ;;  %p457_p3 = scmp.lt.u32.totalorder %s448_s4, %s605_s27 }
  0x14   : > { %p456_p2 = por %p455_p1, %p454_p0 }
  0x15   : > { %p452_p13 = pneg %p451_p12 }
  0x16   : > { %p458_p4 = por %p457_p3, %p456_p2 }
  0x18   : > { %p459_p5 = pnand %p458_p4, %p452_p13 }
  0x1a   : > { %462 = shalt.err (!%p459_p5)
}
  0x1b   : > { %s463_s15 = scalar_lea.vmem %s613_s29, 128  ;;  %s530_s17 = smov [#allocation3]  }
  0x1c   : > { %p464_p6 = scmp.ne.s32.totalorder %s613_s29, %s463_s15  ;;  %s468_s18 = sshll.u32 %s530_s17, 4  ;;  %s469_s18 = int_to_ptr.vmem [resolvable:$false] %s468_s18 }
  0x1d   : > { %s470_s19 = scalar_lea.vmem %s469_s18, 256  ;;  %p471_p12 = scmp.lt.s32.totalorder %s613_s29, %s469_s18 }
  0x1e   : > { %p466_p8 = pnand %p464_p6, %p450_p11  ;;  %p472_p0 = scmp.lt.s32.totalorder %s470_s19, %s463_s15 }
  0x20   : > { %p467_p10 = pneg %p466_p8  ;;  %p473_p1 = por %p472_p0, %p471_p12 }
  0x22   : > { %p474_p2 = pnand %p473_p1, %p467_p10 }
  0x24   : > { %477 = shalt.err (!%p474_p2)
}
  0x25   : > { %s531_s22 = smov 32   ;;  %s532_s23 = smov 2  }
  0x26   : > { %383 = dma.hbm_to_vmem [thread:$0]  (!%p609_p9), %s605_s27, 128, %s613_s29, %s615_s3, %s531_s22, %s531_s22, %s532_s23  }
  0x27   : > { %p370_p11 = scmp.ge.s32.totalorder %s528_s14, 1  ;;  %p158_p13 = scmp.lt.s32.totalorder %s528_s14, 3 }
  0x29   : > { %p159_p3 = pnand %p370_p11, %p158_p13 }
  0x2a   : > { %s164_s24 = sand.u32 (!%p159_p3), 1, %s512_s10  }
  0x2b   : > { %162 = sbr.rel (%p159_p3) target bundleno = 278 (0x116), region = 28  ;;  %s371_s25 = sshll.u32 (!%p159_p3), %s164_s24, 3 }
  0x2c   : > { %s165_s26 = scalar_lea.sflag (!%p159_p3), [#allocation4], %s164_s24  ;;  %s168_s28 = scalar_lea.vmem (!%p159_p3), [#allocation3], %s371_s25 }
  0x32   : > { %503 = dma.done.wait (%p592_p7), %s165_s26, 128  }
  0x33   : > { %505 = vsyncadd (%p592_p7), %s165_s26, 4294967168  ;;  %v533_v0 = vmov 0.0   ;;  %v209_v1 = vld [vmem:[%s168_s28] sm:$0x3]  ;;  %v372_v2 = vld [vmem:[%s168_s28 + $0x2] sm:$0x3] }
  0x34   : > { %208 = vst [vmem:[#allocation2] sm:$0xff] %v533_v0  ;;  %v373_v3 = vld [vmem:[%s168_s28 + $0x4] sm:$0x3]  ;;  %v218_v4 = vmax.f32 %v209_v1, %v372_v2  ;;  %v374_v5 = vld [vmem:[%s168_s28 + $0x6] sm:$0x3]  ;;  %p196_p9 = scmp.lt.s32.totalorder %s520_s12, 1 }
  0x35   : > { %vm270_vm7 = vcmask 0  }
  0x36   : > { %v219_v6 = vmax.f32 %v218_v4, %v373_v3  ;;  %s694_s12 = smov (!%p196_p9, %s520_s12), 1 }
  0x37   : > { %s201_s29 = scalar_lea.vmem %s681_s1, %s694_s12  ;;  %s207_s4 = scalar_lea.vmem %s682_s2, %s694_s12 }
  0x38   : > { %v220_v7 = vmax.f32 %v219_v6, %v374_v5  ;;  %v216_v16 = vld [vmem:[%s201_s29] sm:$0x1] }
  0x39   : > { %v217_v18 = vunpack.c.l.b16 %v216_v16 }
  0x3a   : > { %v221_v8 = vsub.f32 %v209_v1, %v220_v7  ;;  %v227_v9 = vsub.f32 %v372_v2, %v220_v7  ;;  %v233_v10 = vsub.f32 %v373_v3, %v220_v7  ;;  %v239_v11 = vsub.f32 %v374_v5, %v220_v7 }
  0x3b   : > { %vm225_vm0 = vcmp.eq.s32.totalorder %v217_v18, 0  ;;  %vm231_vm1 = vcmp.eq.s32.totalorder %v217_v18, 1  ;;  %vm237_vm2 = vcmp.eq.s32.totalorder %v217_v18, 2  ;;  %vm243_vm3 = vcmp.eq.s32.totalorder %v217_v18, 3  ;;  %v257_v37 = vld [vmem:[#allocation2] sm:$0x3] }
  0x3c   : > { %v222_v12 = vmul.f32 1.442695, %v221_v8  ;;  %v228_v13 = vmul.f32 1.442695, %v227_v9  ;;  %v234_v14 = vmul.f32 1.442695, %v233_v10 }
  0x3d   : > { %v240_v15 = vmul.f32 1.442695, %v239_v11  ;;  %vm252_vm4 = vcmp.ge.s32.totalorder %v217_v18, 0  ;;  %vm253_vm5 = vcmp.lt.s32.totalorder %v217_v18, 4 }
  0x3e   : > { %436 = vpow2.f32 %v222_v12  ;;  %vm254_vm6 = vmand %vm252_vm4, %vm253_vm5 }
  0x3f   : > { %438 = vpow2.f32 %v228_v13 }
  0x40   : > { %440 = vpow2.f32 %v234_v14 }
  0x41   : > { %442 = vpow2.f32 %v240_v15 }
  0x48   : > { %v437_v17 = vpop.eup %436 }
  0x49   : > { %v439_v19 = vpop.eup %438  ;;  %v226_v25 = vsel %vm225_vm0, %v437_v17, 0.0 }
  0x4a   : > { %v441_v20 = vpop.eup %440  ;;  %v230_v21 = vadd.f32 %v439_v19, %v437_v17  ;;  %v232_v26 = vsel %vm231_vm1, %v439_v19, %v226_v25 }
  0x4b   : > { %v443_v22 = vpop.eup %442  ;;  %v238_v27 = vsel %vm237_vm2, %v441_v20, %v232_v26 }
  0x4c   : > { %v236_v23 = vadd.f32 %v441_v20, %v230_v21  ;;  %v244_v28 = vsel %vm243_vm3, %v443_v22, %v238_v27 }
  0x4e   : > { %v242_v24 = vadd.f32 %v443_v22, %v236_v23 }
  0x50   : > { %444 = vrcp.f32 %v242_v24 }
  0x5a   : > { %v445_v29 = vpop.eup %444 }
  0x5b   : > { %v246_v30 = vmul.f32 %v445_v29, %v244_v28 }
  0x5d   : > { %v247_v31 = vadd.f32 1e-06, %v246_v30 }
  0x5f   : > { %446 = vlog2.f32 %v247_v31  ;;  %v250_v32 = vsub.f32 1.0, %v247_v31 }
  0x61   : > { %v251_v33 = vmul.f32 %v250_v32, %v250_v32 }
  0x69   : > { %v447_v34 = vpop.eup %446 }
  0x6a   : > { %v249_v35 = vmul.f32 0.6931472, %v447_v34 }
  0x6c   : > { %v255_v36 = vmul.f32 %v251_v33, %v249_v35 }
  0x6e   : > { %v256_v38 = vsel %vm254_vm6, %v255_v36, 0.0 }
  0x6f   : > { %v258_v39 = vadd.f32 %v257_v37, %v256_v38 }
  0x71   : > { %259 = vst [vmem:[#allocation2] sm:$0x3] %v258_v39 }
  0x78   : > { %v260_v40 = vld [vmem:[#allocation2] sm:$0xff] }
  0x79   : > { %v261_v41 = vrot.slane %v260_v40, 4 }
  0x7b   : > { %v262_v42 = vadd.f32 %v261_v41, %v260_v40 }
  0x7d   : > { %v263_v43 = vrot.slane %v262_v42, 2 }
  0x7f   : > { %v264_v44 = vadd.f32 %v263_v43, %v262_v42 }
  0x81   : > { %v265_v45 = vrot.slane %v264_v44, 1 }
  0x83   : > { %v266_v46 = vadd.f32 %v265_v45, %v264_v44 }
  0x85   : > { %267 = vadd.xlane.f32.xlu0 %v266_v46 }
 0x112   : > { %v268_v47 = vpop.xlane.xlu0 %267 }
 0x113   : > { %v269_v48 = vsub.f32 0.0, %v268_v47 }
 0x115   : > { %271 = vst.msk [vmem:[%s207_s4] sm:$0x1] %vm270_vm7, %v269_v48 }
 0x116 PF: > { %s15_s14 = sadd.s32 1, %s528_s14   ;;  %s686_s9 = smov %s512_s10 }
 0x117   : > { %p12_p7 = scmp.ge.s32.totalorder %s15_s14, 4   ;;  %s687_s10 = smov %s516_s11 }
 0x118   : > { %s688_s11 = smov %s598_s21  ;;  %s689_s12 = smov %s524_s13 }
 0x119   : > { %s690_s13 = smov %s692_s16  ;;  %14 = sbr.rel (!%p12_p7) target bundleno = 4 (0x4), region = 74 }
 0x120   :  { %295 = vsyncpa [#allocation4], 1 }
 0x121   :  { %297 = vsyncpa [#allocation4 + $0x1], 1 }

</bundles_post_ra>
